<compile_context>
chip_gen: v7x
topology: tpu7x:2x2x1
jax: 0.10.0
libtpu: 0.0.40
codegen_flags: <defaults>
</compile_context>

<pallas_src>
import jax
import jax.numpy as jnp
from jax.experimental import pallas as pl
from jax.experimental.pallas import tpu as pltpu


def _round_up(x, m):
    return ((x + m - 1) // m) * m


def _cdiv(a, b):
    return -(-a // b)


def _pick_tm(M, tm):
    """Token-tile rows: <= tm, multiple of 8, and >= 2 grid steps when possible."""
    tm = max(8, min(tm, _round_up(M, 8)))
    if M > 8 and _cdiv(M, tm) < 2:
        tm = max(8, _round_up(_cdiv(M, 2), 8))
    return tm


def _pick_th(C, H, weight_bytes_per_el, resident_budget_bytes=28 << 20):
    """Hidden-dim slice: full H if both weight matrices fit the resident budget,
    else the largest of {512, 256, 128} that divides H."""
    if 2 * C * H * weight_bytes_per_el <= resident_budget_bytes:
        return H
    for cand in (512, 256, 128):
        if H % cand == 0:
            return cand
    return H  # fall back to fully resident (pad H outside for huge odd sizes)


def mlp_kernel(x_ref, w1_ref, b1_ref, w2_ref, b2_ref, o_ref, acc_ref):
    # x_ref:  (tm, C)   token tile (compute dtype), block constant across the H axis
    # w1_ref: (C, th)   c_fc weight slice
    # b1_ref: (1, th)   c_fc bias slice (f32)
    # w2_ref: (th, C)   c_proj weight slice
    # b2_ref: (1, C)    c_proj bias (f32, grid-invariant)
    # o_ref:  (tm, C)   output tile
    # acc_ref:(tm, C)   f32 accumulator scratch
    j = pl.program_id(1)

    @pl.when(j == 0)
    def _init():
        # Fold the c_proj bias into the accumulator init so it is added exactly once.
        acc_ref[...] = jnp.broadcast_to(
            b2_ref[...].astype(jnp.float32), acc_ref.shape)

    # c_fc slice: (tm, C) @ (C, th) -> (tm, th), f32 accumulation on the MXU.
    h = jnp.dot(x_ref[...], w1_ref[...], preferred_element_type=jnp.float32)
    h = h + b1_ref[...]

    # Exact erf-based GELU (matches torch.nn.GELU() default).
    h = 0.5 * h * (1.0 + jax.lax.erf(h * 0.7071067811865476))

    # c_proj partial product: (tm, th) @ (th, C), accumulated in f32.
    acc_ref[...] += jnp.dot(h.astype(w2_ref.dtype), w2_ref[...],
                            preferred_element_type=jnp.float32)

    # Dropout: inference-mode identity (nn.Dropout in eval mode).
    # TODO(synk): training-mode dropout needs pltpu.prng_seed + pltpu.prng_random_bits
    # masking with 1/(1-p) scaling.
    @pl.when(j == pl.num_programs(1) - 1)
    def _finalize():
        o_ref[...] = acc_ref[...].astype(o_ref.dtype)


def mlp_forward(x, w1, b1, w2, b2, *, tm=256, compute_dtype=jnp.bfloat16):
    """x: (B, T, C).  w1:(C,4C) b1:(4C,) w2:(4C,C) b2:(C,).  Returns (B, T, C)."""
    B, T, C = x.shape
    H = w1.shape[1]
    M = B * T
    out_dtype = x.dtype
    cb = jnp.dtype(compute_dtype).itemsize
    ob = jnp.dtype(out_dtype).itemsize

    tm = _pick_tm(M, tm)
    th = _pick_th(C, H, cb)
    M_pad = _round_up(M, tm)
    nj = H // th
    resident = (th == H)

    # Flatten tokens and pad M up to a tile multiple (cheaper than tiny tiles/masks).
    x2d = x.reshape(M, C).astype(compute_dtype)
    if M_pad != M:
        x2d = jnp.pad(x2d, ((0, M_pad - M), (0, 0)))
    w1c = w1.astype(compute_dtype)
    w2c = w2.astype(compute_dtype)
    b1_2d = b1.reshape(1, H).astype(jnp.float32)
    b2_2d = b2.reshape(1, C).astype(jnp.float32)

    # Single-buffer anything whose block index never changes (resident weights).
    def wspec(shape, index_map, is_resident):
        if is_resident:
            return pl.BlockSpec(shape, index_map, pipeline_mode=pl.Buffered(1))
        return pl.BlockSpec(shape, index_map)

    in_specs = [
        pl.BlockSpec((tm, C), lambda i, j: (i, 0)),       # x tile (constant over j)
        wspec((C, th), lambda i, j: (0, j), resident),    # w1 slice
        wspec((1, th), lambda i, j: (0, j), resident),    # b1 slice
        wspec((th, C), lambda i, j: (j, 0), resident),    # w2 slice
        wspec((1, C), lambda i, j: (0, 0), True),         # b2 (always resident)
    ]
    out_spec = pl.BlockSpec((tm, C), lambda i, j: (i, 0))

    # Explicit VMEM budget (defaults are 16/32 MiB; physical >= 64 MiB on all chips).
    w_bufs = 1 if resident else 2
    vmem_needed = (
        w_bufs * (C * th + th * C) * cb        # w1 + w2 slices
        + w_bufs * th * 4 + C * 4              # b1 slice + b2 (f32)
        + 2 * tm * C * cb                      # x tile, double-buffered
        + 2 * tm * C * ob                      # out tile, double-buffered
        + tm * C * 4                           # f32 accumulator scratch
    )
    vmem_limit = min(int(vmem_needed * 1.5) + (4 << 20), 64 << 20)

    cost = pl.CostEstimate(
        flops=4 * M_pad * C * H,               # two matmuls: 2 * 2*M*C*H
        transcendentals=M_pad * H,             # erf
        bytes_accessed=(M_pad * C * cb         # x
                        + 2 * C * H * cb       # w1 + w2
                        + (H + C) * 4          # biases
                        + M_pad * C * ob),     # output
    )

    out = pl.pallas_call(
        mlp_kernel,
        out_shape=jax.ShapeDtypeStruct((M_pad, C), out_dtype),
        grid_spec=pltpu.PrefetchScalarGridSpec(
            num_scalar_prefetch=0,
            grid=(M_pad // tm, nj),
            in_specs=in_specs,
            out_specs=out_spec,
            scratch_shapes=[pltpu.VMEM((tm, C), jnp.float32)],
        ),
        compiler_params=pltpu.CompilerParams(
            dimension_semantics=("parallel", "arbitrary"),
            vmem_limit_bytes=vmem_limit,
        ),
        cost_estimate=cost,
    )(x2d, w1c, b1_2d, w2c, b2_2d)

    if M_pad != M:
        out = out[:M]
    return out.reshape(B, T, C)


def reference_mlp(x, w1, b1, w2, b2):
    h = jnp.einsum("btc,ch->bth", x, w1) + b1
    h = jax.nn.gelu(h, approximate=False)
    y = jnp.einsum("bth,hc->btc", h, w2) + b2
    return y


if __name__ == "__main__":
    # small GPT-ish config: n_embd=32, bias=True, dropout=0.0 (eval / identity)
    B, T, C = 2, 8, 32
    H = 4 * C

    key = jax.random.PRNGKey(0)
    kx, kw1, kb1, kw2, kb2 = jax.random.split(key, 5)

    x = jax.random.normal(kx, (B, T, C), dtype=jnp.float32)
    # deterministic "Kaiming-ish" init, stored as (in, out) = W.T of torch layout
    w1 = jax.random.normal(kw1, (C, H), dtype=jnp.float32) * (1.0 / jnp.sqrt(C))
    b1 = jax.random.normal(kb1, (H,), dtype=jnp.float32) * 0.01
    w2 = jax.random.normal(kw2, (H, C), dtype=jnp.float32) * (1.0 / jnp.sqrt(H))
    b2 = jax.random.normal(kb2, (C,), dtype=jnp.float32) * 0.01

    y_ref = reference_mlp(x, w1, b1, w2, b2)

    # f32 compute path: numerically faithful to the torch module (tight tolerance).
    y_f32 = jax.block_until_ready(
        mlp_forward(x, w1, b1, w2, b2, compute_dtype=jnp.float32))
    assert y_f32.shape == (B, T, C)
    assert jnp.allclose(y_f32, y_ref, atol=1e-4, rtol=1e-4), "f32 mismatch vs reference"

    # default fast path: bf16 matmuls with f32 accumulation (looser tolerance).
    y_bf16 = jax.block_until_ready(mlp_forward(x, w1, b1, w2, b2))
    assert y_bf16.shape == (B, T, C)
    assert jnp.allclose(y_bf16, y_ref, atol=3e-2, rtol=3e-2), "bf16 mismatch vs reference"

    print("KERNEL_OK")
</pallas_src>

<mosaic_0001>
module attributes {stable_mosaic.version = 11 : i64} {
  func.func @mlp_kernel(%arg0: i32, %arg1: i32, %arg2: memref<8x32xf32, #tpu.memory_space<vmem>>, %arg3: memref<32x128xf32, #tpu.memory_space<vmem>>, %arg4: memref<1x128xf32, #tpu.memory_space<vmem>>, %arg5: memref<128x32xf32, #tpu.memory_space<vmem>>, %arg6: memref<1x32xf32, #tpu.memory_space<vmem>>, %arg7: memref<8x32xf32, #tpu.memory_space<vmem>>, %arg8: memref<8x32xf32, #tpu.memory_space<vmem>>) attributes {dimension_semantics = [#tpu.dimension_semantics<parallel>, #tpu.dimension_semantics<arbitrary>], iteration_bounds = array<i64: 2, 1>, scalar_prefetch = 0 : i64, scratch_operands = 1 : i64, tpu.core_type = #tpu.core_type<tc>, window_params = [{transform_indices = @transform_0, window_bounds = array<i64: 8, 32>}, {pipeline_mode = #tpu.pipeline_mode<synchronous>, transform_indices = @transform_1, window_bounds = array<i64: 32, 128>}, {pipeline_mode = #tpu.pipeline_mode<synchronous>, transform_indices = @transform_2, window_bounds = array<i64: 1, 128>}, {pipeline_mode = #tpu.pipeline_mode<synchronous>, transform_indices = @transform_3, window_bounds = array<i64: 128, 32>}, {pipeline_mode = #tpu.pipeline_mode<synchronous>, transform_indices = @transform_4, window_bounds = array<i64: 1, 32>}, {transform_indices = @transform_5, window_bounds = array<i64: 8, 32>}]} {
    %c0_i32 = arith.constant 0 : i32
    %0 = arith.cmpi eq, %arg1, %c0_i32 : i32
    %1 = arith.extui %0 : i1 to i32
    %c0_i32_0 = arith.constant 0 : i32
    %2 = arith.cmpi ne, %1, %c0_i32_0 : i32
    scf.if %2 {
      %c0_18 = arith.constant 0 : index
      %c0_19 = arith.constant 0 : index
      %25 = vector.load %arg6[%c0_18, %c0_19] : memref<1x32xf32, #tpu.memory_space<vmem>>, vector<1x32xf32>
      %26 = vector.shape_cast %25 : vector<1x32xf32> to vector<1x32xf32>
      %27 = vector.broadcast %26 : vector<1x32xf32> to vector<8x32xf32>
      %c0_20 = arith.constant 0 : index
      %c0_21 = arith.constant 0 : index
      %28 = vector.load %arg8[%c0_20, %c0_21] : memref<8x32xf32, #tpu.memory_space<vmem>>, vector<8x32xf32>
      tpu.vector_store %arg8[%c0_20, %c0_21], %27 {strides = array<i32>} : memref<8x32xf32, #tpu.memory_space<vmem>>, vector<8x32xf32>,
    } else {
    }
    %c0 = arith.constant 0 : index
    %c0_1 = arith.constant 0 : index
    %3 = vector.load %arg2[%c0, %c0_1] : memref<8x32xf32, #tpu.memory_space<vmem>>, vector<8x32xf32>
    %c0_2 = arith.constant 0 : index
    %c0_3 = arith.constant 0 : index
    %4 = vector.load %arg3[%c0_2, %c0_3] : memref<32x128xf32, #tpu.memory_space<vmem>>, vector<32x128xf32>
    %cst = arith.constant dense<0.000000e+00> : vector<8x128xf32>
    %5 = tpu.matmul %3, %4, %cst {dimension_numbers = #tpu.dot_dimension_numbers<[1], [0], [0], [1], [0, 0, 1, 1], [], []>} : vector<8x32xf32>, vector<32x128xf32>, vector<8x128xf32> -> vector<8x128xf32>
    %c0_4 = arith.constant 0 : index
    %c0_5 = arith.constant 0 : index
    %6 = vector.load %arg4[%c0_4, %c0_5] : memref<1x128xf32, #tpu.memory_space<vmem>>, vector<1x128xf32>
    %7 = vector.broadcast %6 : vector<1x128xf32> to vector<8x128xf32>
    %8 = arith.addf %5, %7 : vector<8x128xf32>
    %cst_6 = arith.constant 5.000000e-01 : f32
    %9 = vector.broadcast %cst_6 : f32 to vector<8x128xf32>
    %10 = arith.mulf %9, %8 : vector<8x128xf32>
    %cst_7 = arith.constant 0.707106769 : f32
    %11 = vector.broadcast %cst_7 : f32 to vector<8x128xf32>
    %12 = arith.mulf %8, %11 : vector<8x128xf32>
    %13 = math.erf %12 : vector<8x128xf32>
    %cst_8 = arith.constant 1.000000e+00 : f32
    %14 = vector.broadcast %cst_8 : f32 to vector<8x128xf32>
    %15 = arith.addf %14, %13 : vector<8x128xf32>
    %16 = arith.mulf %10, %15 : vector<8x128xf32>
    %c0_9 = arith.constant 0 : index
    %c0_10 = arith.constant 0 : index
    %17 = vector.load %arg8[%c0_9, %c0_10] : memref<8x32xf32, #tpu.memory_space<vmem>>, vector<8x32xf32>
    %c0_11 = arith.constant 0 : index
    %c0_12 = arith.constant 0 : index
    %18 = vector.load %arg5[%c0_11, %c0_12] : memref<128x32xf32, #tpu.memory_space<vmem>>, vector<128x32xf32>
    %cst_13 = arith.constant dense<0.000000e+00> : vector<8x32xf32>
    %19 = tpu.matmul %16, %18, %cst_13 {dimension_numbers = #tpu.dot_dimension_numbers<[1], [0], [0], [1], [0, 0, 1, 1], [], []>} : vector<8x128xf32>, vector<128x32xf32>, vector<8x32xf32> -> vector<8x32xf32>
    %20 = arith.addf %17, %19 : vector<8x32xf32>
    %c0_14 = arith.constant 0 : index
    %c0_15 = arith.constant 0 : index
    %21 = vector.load %arg8[%c0_14, %c0_15] : memref<8x32xf32, #tpu.memory_space<vmem>>, vector<8x32xf32>
    tpu.vector_store %arg8[%c0_14, %c0_15], %20 {strides = array<i32>} : memref<8x32xf32, #tpu.memory_space<vmem>>, vector<8x32xf32>,
    %c0_i32_16 = arith.constant 0 : i32
    %22 = arith.cmpi eq, %arg1, %c0_i32_16 : i32
    %23 = arith.extui %22 : i1 to i32
    %c0_i32_17 = arith.constant 0 : i32
    %24 = arith.cmpi ne, %23, %c0_i32_17 : i32
    scf.if %24 {
      %c0_18 = arith.constant 0 : index
      %c0_19 = arith.constant 0 : index
      %25 = vector.load %arg8[%c0_18, %c0_19] : memref<8x32xf32, #tpu.memory_space<vmem>>, vector<8x32xf32>
      %c0_20 = arith.constant 0 : index
      %c0_21 = arith.constant 0 : index
      %26 = vector.load %arg7[%c0_20, %c0_21] : memref<8x32xf32, #tpu.memory_space<vmem>>, vector<8x32xf32>
      tpu.vector_store %arg7[%c0_20, %c0_21], %25 {strides = array<i32>} : memref<8x32xf32, #tpu.memory_space<vmem>>, vector<8x32xf32>,
    } else {
    }
    return
  }
  func.func @transform_0(%arg0: i32, %arg1: i32) -> (i32, i32) {
    %c0_i32 = arith.constant 0 : i32
    %c0_i32_0 = arith.constant 0 : i32
    return %arg0, %c0_i32 : i32, i32
  }
  func.func @transform_1(%arg0: i32, %arg1: i32) -> (i32, i32) {
    %c0_i32 = arith.constant 0 : i32
    %c0_i32_0 = arith.constant 0 : i32
    return %c0_i32, %arg1 : i32, i32
  }
  func.func @transform_2(%arg0: i32, %arg1: i32) -> (i32, i32) {
    %c0_i32 = arith.constant 0 : i32
    %c0_i32_0 = arith.constant 0 : i32
    return %c0_i32, %arg1 : i32, i32
  }
  func.func @transform_3(%arg0: i32, %arg1: i32) -> (i32, i32) {
    %c0_i32 = arith.constant 0 : i32
    %c0_i32_0 = arith.constant 0 : i32
    return %arg1, %c0_i32 : i32, i32
  }
  func.func @transform_4(%arg0: i32, %arg1: i32) -> (i32, i32) {
    %c0_i32 = arith.constant 0 : i32
    %c0_i32_0 = arith.constant 0 : i32
    %c0_i32_1 = arith.constant 0 : i32
    return %c0_i32, %c0_i32_0 : i32, i32
  }
  func.func @transform_5(%arg0: i32, %arg1: i32) -> (i32, i32) {
    %c0_i32 = arith.constant 0 : i32
    %c0_i32_0 = arith.constant 0 : i32
    return %arg0, %c0_i32 : i32, i32
  }
}

</mosaic_0001>

<bundles_post_ra>
// kernel: tpu_custom_call.1
= control target key start
LH: loop header
LB: loop body
LE: loop exit
PB: predicated region body
PF: predicated region fallthrough
CT: control target
= control target key end

     0   :  { %10 = vsyncpa [#allocation4], 0  ;;  %s1077_s0 = inlined_call_operand.vmem [shape: f32[16,32], index: 0, kind: input, shape index: {}]   ;;  %s1078_s1 = inlined_call_operand.vmem [shape: f32[32,128], index: 1, kind: input, shape index: {}]   ;;  %s1079_s2 = inlined_call_operand.vmem [shape: f32[1,128], index: 2, kind: input, shape index: {}]   ;;  %s1080_s3 = inlined_call_operand.vmem [shape: f32[128,32], index: 3, kind: input, shape index: {}]   ;;  %s1081_s4 = inlined_call_operand.vmem [shape: f32[1,32], index: 4, kind: input, shape index: {}]   ;;  %s1082_s5 = inlined_call_operand.hbm [shape: f32[16,32], index: 5, kind: output, shape index: {}]  }
   0x1   :  { %12 = vsyncpa [#allocation4 + $0x1], 0  ;;  %s895_s18 = smov 0   ;;  %s897_s19 = smov 0  }
   0x2   :  { %s899_s20 = smov 0   ;;  %s901_s21 = smov 0  }
   0x3   :  { %s903_s22 = smov 0   ;;  %s905_s23 = smov 0  }
   0x4 LB: > { %s606_s24 = sadd.s32 4294967295, %s859_s23   ;;  %s607_s25 = sadd.s32 4294967294, %s859_s23   ;;  %s859_s23 = sphi %s905_s23, %s18_s23   ;;  %s855_s22 = sphi %s903_s22, %s1089_s22   ;;  %s851_s21 = sphi %s901_s21, %s1088_s21   ;;  %s847_s20 = sphi %s899_s20, %s1087_s20   ;;  %s843_s19 = sphi %s897_s19, %s1086_s19   ;;  %s839_s18 = sphi %s895_s18, %s1085_s18  }
   0x5   : > { %s30_s26 = sadd.s32 1, %s855_s22  ;;  %s162_s27 = sadd.s32 1, %s847_s20 }
   0x6   : > { %p32_p0 = scmp.ge.s32.totalorder %s30_s26, 2  ;;  %p172_p1 = scmp.ne.s32.totalorder %s847_s20, %s843_s19 }
   0x7   : > { %p173_p2 = scmp.eq.s32.totalorder %s606_s24, 1  ;;  %p178_p3 = scmp.ne.s32.totalorder %s843_s19, %s839_s18 }
   0x8   : > { %s1091_s26 = smov (%p32_p0, %s30_s26), 0  ;;  %p179_p5 = scmp.eq.s32.totalorder %s607_s25, 1 }
   0x9   : > { %p935_p4 = por %p173_p2, %p172_p1  ;;  %s159_s29 = ssub.s32 %s855_s22, %s1091_s26 }
   0xa   : > { %p613_p6 = scmp.ge.s32.totalorder %s859_s23, 1  ;;  %p160_p7 = scmp.eq.s32.totalorder %s159_s29, 0 }
   0xb   : > { %p942_p8 = por %p179_p5, %p178_p3  ;;  %p229_p9 = scmp.lt.s32.totalorder %s859_s23, 3 }
   0xc   : > { %s948_s6 = scalar_select %p160_p7, %s847_s20, %s162_s27  }
   0xd   : > { %p230_p10 = pnand %p613_p6, %p229_p9 }
   0xe   : > { %v299_v0 = vld [vmem:[%s1078_s1] sm:$0xff] (!%p230_p10)  ;;  %v300_v1 = vld [vmem:[%s1078_s1 + $0x8] sm:$0xff] (!%p230_p10)  ;;  %v301_v2 = vld [vmem:[%s1078_s1 + $0x10] sm:$0xff] (!%p230_p10)  ;;  %v861_v3 = vmov (!%p230_p10), 0.0|0.0   ;;  %vm862_vm0 = vmmov (!%p230_p10), 0   ;;  %v863_v6 = vmov (!%p230_p10), 0.0  }
   0xf   : > { %233 = sbr.rel (%p230_p10) target bundleno = 494 (0x1ee), region = 40  ;;  %691 = vmatprep.subr.bf16.mxu0 (!%p230_p10), %v861_v3  ;;  %v692_v4 = vpack.c.bf16 (!%p230_p10), %v300_v1, %v299_v0  ;;  %v302_v5 = vld [vmem:[%s1078_s1 + $0x18] sm:$0xff] (!%p230_p10)  ;;  %653 = vmatprep.mubr.msk.f32.mxu0 (!%p230_p10), %vm862_vm0, %v863_v6  ;;  %p268_p11 = scmp.lt.s32.totalorder (!%p230_p10), %s851_s21, 1  ;;  %v616_v7 = vld [vmem:[%s1081_s4] ss:$0 sm:$0xff] (!%p230_p10)  ;;  %vm296_vm1 = vcmask (!%p230_p10), 261120  }
  0x10   : > { %v390_v8 = vld [vmem:[%s1080_s3] sm:$0xff] (!%p230_p10)  ;;  %297 = vst.msk [vmem:[#allocation2] sm:$0xff] (!%p230_p10), %vm296_vm1, %v616_v7  ;;  %697 = vmatprep.subr.bf16.mxu1 (!%p230_p10), %v861_v3  ;;  %v391_v9 = vld [vmem:[%s1080_s3 + $0x8] sm:$0xff] (!%p230_p10)  ;;  %v392_v10 = vld [vmem:[%s1080_s3 + $0x10] sm:$0xff] (!%p230_p10)  ;;  %688 = vmatprep.mubr.msk.f32.mxu1 (!%p230_p10), %vm862_vm0, %v863_v6  ;;  %v695_v12 = vpack.c.bf16 (!%p230_p10), %v302_v5, %v301_v2  ;;  %s620_s13 = sshll.u32 (!%p230_p10), %s851_s21, 7 }
  0x11   : > { %v393_v11 = vld [vmem:[%s1080_s3 + $0x18] sm:$0xff] (!%p230_p10)  ;;  %693 = vmatpush3.bf16.msra.mxu0 (!%p230_p10), %v692_v4  ;;  %v698_v13 = vpack.c.bf16 (!%p230_p10), %v391_v9, %v390_v8  ;;  %v394_v15 = vld [vmem:[%s1080_s3 + $0x20] sm:$0xff] (!%p230_p10)  ;;  %v395_v16 = vld [vmem:[%s1080_s3 + $0x28] sm:$0xff] (!%p230_p10)  ;;  %s1029_s24 = scalar_lea.hbm (!%p230_p10), %s1082_s5, %s620_s13 }
  0x12   : > { %694 = vmatprep.subr.bf16.mxu0 (!%p230_p10), %v861_v3  ;;  %v701_v14 = vpack.c.bf16 (!%p230_p10), %v393_v11, %v392_v10  ;;  %v704_v18 = vpack.c.bf16 (!%p230_p10), %v395_v16, %v394_v15  ;;  %v396_v19 = vld [vmem:[%s1080_s3 + $0x30] sm:$0xff] (!%p230_p10)  ;;  %v397_v20 = vld [vmem:[%s1080_s3 + $0x38] sm:$0xff] (!%p230_p10)  ;;  %v398_v22 = vld [vmem:[%s1080_s3 + $0x40] sm:$0xff] (!%p230_p10) }
  0x13   : > { %699 = vmatpush3.bf16.msra.mxu1 (!%p230_p10), %v698_v13  ;;  %v707_v21 = vpack.c.bf16 (!%p230_p10), %v397_v20, %v396_v19  ;;  %v399_v23 = vld [vmem:[%s1080_s3 + $0x48] sm:$0xff] (!%p230_p10)  ;;  %v400_v25 = vld [vmem:[%s1080_s3 + $0x50] sm:$0xff] (!%p230_p10)  ;;  %v401_v26 = vld [vmem:[%s1080_s3 + $0x58] sm:$0xff] (!%p230_p10) }
  0x14   : > { %700 = vmatprep.subr.bf16.mxu1 (!%p230_p10), %v861_v3  ;;  %v710_v24 = vpack.c.bf16 (!%p230_p10), %v399_v23, %v398_v22  ;;  %v713_v27 = vpack.c.bf16 (!%p230_p10), %v401_v26, %v400_v25  ;;  %v402_v28 = vld [vmem:[%s1080_s3 + $0x60] sm:$0xff] (!%p230_p10)  ;;  %v403_v29 = vld [vmem:[%s1080_s3 + $0x68] sm:$0xff] (!%p230_p10)  ;;  %v404_v31 = vld [vmem:[%s1080_s3 + $0x70] sm:$0xff] (!%p230_p10) }
  0x15   : > { %696 = vmatpush3.bf16.msra.mxu0 (!%p230_p10), %v695_v12  ;;  %v716_v30 = vpack.c.bf16 (!%p230_p10), %v403_v29, %v402_v28  ;;  %v405_v32 = vld [vmem:[%s1080_s3 + $0x78] sm:$0xff] (!%p230_p10)  ;;  %v617_v34 = vld [vmem:[%s1079_s2] ss:$0 sm:$0xff] (!%p230_p10) }
  0x16   : > { %s269_s10 = scalar_select %p268_p11, %s851_s21, 1  ;;  %v719_v33 = vpack.c.bf16 %v405_v32, %v404_v31 }
  0x17   : > { %702 = vmatpush3.bf16.msra.mxu1 %v701_v14  ;;  %v389_v43 = vld [vmem:[#allocation2] sm:$0xff]  ;;  %s864_s21 = smov [#allocation3]  }
  0x18   : > { %s615_s11 = sshll.u32 %s269_s10, 3  ;;  %703 = vmatprep.subr.bf16.mxu1 %v861_v3  ;;  %s785_s29 = sshll.u32 %s864_s21, 4  ;;  %s786_s29 = int_to_ptr.vmem [resolvable:$false] %s785_s29 }
  0x19   : > { %s271_s14 = scalar_lea.vmem %s1077_s0, %s615_s11  ;;  %s265_s11 = sand.u32 1, %s843_s19  }
  0x1a   : > { %v298_v17 = vld [vmem:[%s271_s14] sm:$0xff]  ;;  %s614_s12 = sshll.u32 %s265_s11, 3  ;;  %s484_s25 = scalar_lea.sflag [#allocation4], %s265_s11 }
  0x1b   : > { %654 = vmatmul.mubr.msk.f32.vlgmr.msra.gmra.mrb[0].mxu0 %vm296_vm1, %v298_v17  ;;  %705 = vmatpush3.bf16.msra.mxu1 %v704_v18  ;;  %s267_s14 = scalar_lea.vmem [#allocation3], %s614_s12  ;;  %s787_s7 = scalar_lea.vmem %s786_s29, 256 }
  0x1c   : > { %706 = vmatprep.subr.bf16.mxu1 %v861_v3  ;;  %s497_s15 = sshll.u32 %s267_s14, 4  ;;  %s1031_s15 = int_to_ptr.vmem [resolvable:$true] %s497_s15 }
  0x1d   : > { %s781_s27 = scalar_lea.vmem %s1031_s15, 128  ;;  %p788_p1 = scmp.lt.s32.totalorder %s1031_s15, %s786_s29 }
  0x1e   : > { %p782_p12 = scmp.ne.s32.totalorder %s1031_s15, %s781_s27  ;;  %p789_p2 = scmp.lt.s32.totalorder %s787_s7, %s781_s27 }
  0x1f   : > { %708 = vmatpush3.bf16.msra.mxu1 %v707_v21 }
  0x20   : > { %709 = vmatprep.subr.bf16.mxu1 %v861_v3  ;;  %p783_p13 = pnand %p782_p12, %p935_p4  ;;  %p790_p3 = por %p789_p2, %p788_p1 }
  0x22   : > { %p784_p0 = pneg %p783_p13 }
  0x23   : > { %711 = vmatpush3.bf16.msra.mxu1 %v710_v24 }
  0x24   : > { %712 = vmatprep.subr.bf16.mxu1 %v861_v3  ;;  %p791_p5 = pnand %p790_p3, %p784_p0 }
  0x27   : > { %714 = vmatpush3.bf16.msra.mxu1 %v713_v27 }
  0x28   : > { %715 = vmatprep.subr.bf16.mxu1 %v861_v3 }
  0x2b   : > { %717 = vmatpush3.bf16.msra.mxu1 %v716_v30 }
  0x2c   : > { %718 = vmatprep.subr.bf16.mxu1 %v861_v3 }
  0x2f   : > { %720 = vmatpush3.bf16.msra.mxu1 %v719_v33 }
  0xee   : > { %v380_v35 = vpop.f32.mrb[0].mxu0 }
  0xef   : > { %v381_v36 = vadd.f32 %v617_v34, %v380_v35  ;;  %v655_v37 = vpop.f32.mrb[1].mxu0 }
  0xf1   : > { %v385_v38 = vmul.f32 0.70710677, %v381_v36  ;;  %v384_v40 = vmul.f32 0.5, %v381_v36 }
  0xf3   : > { %779 = verf.f32 %v385_v38 }
  0xfd   : > { %v780_v39 = vpop.eup %779 }
  0xfe   : > { %v387_v41 = vadd.f32 1.0, %v780_v39 }
 0x100   : > { %v388_v42 = vmul.f32 %v387_v41, %v384_v40 }
 0x102   : > { %689 = vmatmul.mubr.f32.vlgmr.msra.gmra.mrb[0].mxu1 %v388_v42 }
 0x1d5   : > { %v472_v44 = vpop.f32.mrb[0].mxu1 }
 0x1d6   : > { %v476_v45 = vadd.f32 %v472_v44, %v389_v43  ;;  %v690_v46 = vpop.f32.mrb[1].mxu1 }
 0x1d8   : > { %477 = vst.msk [vmem:[#allocation2] sm:$0xff] %vm296_vm1, %v476_v45 }
 0x1df   : > { %v481_v47 = vld [vmem:[#allocation2] sm:$0xff] }
 0x1e0   : > { %482 = vst.msk [vmem:[%s267_s14] sm:$0xff] %vm296_vm1, %v481_v47 }
 0x1e1   : > { %794 = shalt.err (!%p791_p5)
}
 0x1e2   : > { %s795_s8 = scalar_lea.hbm %s1029_s24, 128  ;;  %s799_s11 = scalar_lea.hbm %s1082_s5, 256 }
 0x1e3   : > { %p796_p6 = scmp.ne.s32.totalorder %s1029_s24, %s795_s8  ;;  %p800_p10 = scmp.lt.u32.totalorder %s1029_s24, %s1082_s5 }
 0x1e4   : > { %p801_p11 = scmp.lt.u32.totalorder %s799_s11, %s795_s8  ;;  %p803_p13 = scmp.lt.u32.totalorder %s795_s8, %s1029_s24 }
 0x1e5   : > { %p797_p7 = pnand %p796_p6, %p935_p4 }
 0x1e6   : > { %p802_p12 = por %p801_p11, %p800_p10 }
 0x1e7   : > { %p798_p9 = pneg %p797_p7 }
 0x1e8   : > { %p804_p0 = por %p803_p13, %p802_p12 }
 0x1ea   : > { %p805_p1 = pnand %p804_p0, %p798_p9 }
 0x1ec   : > { %808 = shalt.err (!%p805_p1)
}
 0x1ed   : > { %721 = dma.vmem_to_hbm [thread:$0]  (%p935_p4), %s1031_s15, 128, %s1029_s24, %s484_s25  }
 0x1ee PF: > { %p727_p2 = scmp.ge.s32.totalorder %s859_s23, 2  ;;  %s509_s14 = sand.u32 1, %s839_s18  }
 0x1ef   : > { %s510_s16 = scalar_lea.sflag [#allocation4], %s509_s14 }
 0x1f0   : > { %p724_p3 = pnand %p727_p2, %p942_p8 }
 0x1f2   : > { %834 = dma.done.wait (!%p724_p3), %s510_s16, 128  }
 0x1f3   : > { %836 = vsyncadd (!%p724_p3), %s510_s16, 4294967168  ;;  %s18_s23 = sadd.s32 1, %s859_s23   ;;  %s1085_s18 = smov %s843_s19 }
 0x1f4   : > { %p15_p5 = scmp.ge.s32.totalorder %s18_s23, 4   ;;  %s1086_s19 = smov %s847_s20 }
 0x1f5   : > { %s1087_s20 = smov %s948_s6  ;;  %s1088_s21 = smov %s855_s22 }
 0x1f6   : > { %s1089_s22 = smov %s1091_s26  ;;  %17 = sbr.rel (!%p15_p5) target bundleno = 4 (0x4), region = 92 }
 0x1fd   :  { %515 = vsyncpa [#allocation4], 1 }
 0x1fe   :  { %517 = vsyncpa [#allocation4 + $0x1], 1 }

</bundles_post_ra>
